<compile_context>
chip_gen: v5e
topology: v5e:2x2
jax: 0.10.0
libtpu: 0.0.40
codegen_flags: <defaults>
</compile_context>

<pallas_src>
import functools
import math

import jax
import jax.numpy as jnp
from jax import lax
from jax.experimental import pallas as pl
from jax.experimental.pallas import tpu as pltpu


def _round_up(x, m):
    return (x + m - 1) // m * m


def _gelu_erf(x):
    # exact (erf-based) gelu, same as torch.nn.functional.gelu default
    return 0.5 * x * (1.0 + lax.erf(x * (1.0 / math.sqrt(2.0))))


def _gelu_tanh(x):
    # tanh approximation -> EUP slot (used on v5e)
    c = math.sqrt(2.0 / math.pi)
    return 0.5 * x * (1.0 + jnp.tanh(c * (x + 0.044715 * x * x * x)))


def _layernorm(x, g, b, lane_mask, d_true, eps=1e-5):
    # x: (rows, Dp) fp32 with padded lanes == 0.  Statistics over the true D lanes.
    inv_d = 1.0 / d_true
    mu = jnp.sum(x, axis=-1, keepdims=True) * inv_d
    xc = (x - mu) * lane_mask                      # re-zero padded lanes
    var = jnp.sum(xc * xc, axis=-1, keepdims=True) * inv_d
    return xc * lax.rsqrt(var + eps) * g + b       # g/b zero-padded -> padded lanes 0


# ----------------------------- chip / budget helpers -----------------------------
def _device_kind():
    try:
        return jax.devices()[0].device_kind.lower()
    except Exception:
        return ""


def _physical_vmem_bytes():
    try:
        return int(pltpu.get_tpu_info().vmem_capacity_bytes)
    except Exception:
        kind = _device_kind()
        return (64 if "v7" in kind else 128) * 1024 * 1024


def _default_seq_tile(kind):
    if "v6" in kind:
        return 512      # St=256 leaves kernel B's inner loop HBM-bound on v6e
    if "v7" in kind:
        return 384      # crossover ~310 flops/byte; paid for by Buffered(1) weights
    return 256          # v5e already compute-bound at 256


def _nbytes(entries):
    return sum(math.prod(s) * jnp.dtype(d).itemsize for s, d in entries)


def _blocks_a(St, Dp, dIp):
    f32, bf16 = jnp.float32, jnp.bfloat16
    pipelined = [((St, Dp), f32)] + [((St, Dp), bf16)] * 3            # x in, nx/w1/w2 out
    resident = ([((Dp, 2 * dIp), bf16), ((1, 2 * dIp), f32),          # fused fc1
                 ((dIp, Dp), bf16), ((dIp, Dp), bf16),                # h1/h2 fc2
                 ((St, 2 * dIp), f32)]                                # hid temp
                + [((1, Dp), f32)] * 4)                               # ln g/b, fc2 biases
    return pipelined, resident


def _blocks_b(St, Dp, dIp):
    f32, bf16 = jnp.float32, jnp.bfloat16
    pipelined = [((St, Dp), f32), ((St, Dp), f32)] + [((St, Dp), bf16)] * 3  # x,out,w1,w2,nx
    resident = ([((Dp, dIp), bf16), ((dIp, Dp), bf16), ((1, dIp), f32),      # fm weights
                 ((St, Dp), f32),                                            # acc scratch
                 ((St, St), f32), ((St, dIp), f32)]                          # w3 / hid temps
                + [((1, Dp), f32)] * 3)                                      # ln g/b, fb2
    return pipelined, resident


def _working_set(blocks):
    pipelined, resident = blocks
    return 2 * _nbytes(pipelined) + _nbytes(resident)


def _vmem_request(blocks, cap):
    need = _working_set(blocks)
    want = max(int(1.5 * need), 32 * 1024 * 1024)     # 1.5x slack for compiler temps
    return min(want, cap)


# --------------------------- Kernel A: LN + hyper MLPs ---------------------------
def _hyper_mlp_kernel(x_ref, g_ref, b_ref,
                      w12a_ref, b12a_ref,
                      h1w2_ref, h1b2_ref, h2w2_ref, h2b2_ref,
                      nx_ref, w1_ref, w2_ref,
                      *, d_true, d_inner_p, approx_gelu):
    gelu = _gelu_tanh if approx_gelu else _gelu_erf
    dp = x_ref.shape[-1]
    lane = lax.broadcasted_iota(jnp.int32, (1, dp), 1)
    lane_mask = (lane < d_true).astype(jnp.float32)

    g = g_ref[...]
    b = b_ref[...]

    xb = x_ref[0]                                          # (tS, Dp) fp32
    nx = _layernorm(xb, g, b, lane_mask, d_true)
    nx_bf = nx.astype(jnp.bfloat16)

    # Fused first layer of both hyper-MLPs: one (tS, 2*dIp) matmul.
    hid = jnp.dot(nx_bf, w12a_ref[...], preferred_element_type=jnp.float32)
    hid = gelu(hid + b12a_ref[...])
    hid_bf = hid.astype(jnp.bfloat16)

    w1 = jnp.dot(hid_bf[:, :d_inner_p], h1w2_ref[...],
                 preferred_element_type=jnp.float32) + h1b2_ref[...]
    w2 = jnp.dot(hid_bf[:, d_inner_p:], h2w2_ref[...],
                 preferred_element_type=jnp.float32) + h2b2_ref[...]

    nx_ref[0] = nx_bf
    w1_ref[0] = w1.astype(jnp.bfloat16)
    w2_ref[0] = w2.astype(jnp.bfloat16)


# --------------- Kernel B: causal token mixer + feature mixer (flash-style) ------
def _mixer_kernel(qtab_ref, ktab_ref,
                  x_ref, w1_ref, w2_ref, nx_ref,
                  g_ref, b_ref,
                  fw1_ref, fb1_ref, fw2_ref, fb2_ref,
                  out_ref, acc_ref,
                  *, d_true, approx_gelu):
    gelu = _gelu_tanh if approx_gelu else _gelu_erf
    t = pl.program_id(1)
    q = qtab_ref[t]
    k = ktab_ref[t]

    @pl.when(k == 0)
    def _init():
        acc_ref[...] = jnp.zeros_like(acc_ref)

    @pl.when(k < q)                                 # off-diagonal: no mask needed
    def _accumulate_offdiag():
        w1 = w1_ref[0]                              # (tS, Dp) bf16, query rows
        w2 = w2_ref[0]                              # (tS, Dp) bf16, key rows
        # Contract the shared feature dim directly (no .T -> no transpose copy).
        w3 = lax.dot_general(w1, w2, (((1,), (1,)), ((), ())),
                             preferred_element_type=jnp.float32)   # (tS, tS) fp32
        acc_ref[...] += jnp.dot(w3.astype(jnp.bfloat16), nx_ref[0],
                                preferred_element_type=jnp.float32)

    @pl.when(k == q)                                # diagonal block: mask + finalize
    def _diag_and_finalize():
        w1 = w1_ref[0]
        w2 = w2_ref[0]
        w3 = lax.dot_general(w1, w2, (((1,), (1,)), ((), ())),
                             preferred_element_type=jnp.float32)
        st = w3.shape[0]
        row = lax.broadcasted_iota(jnp.int32, (st, st), 0)
        col = lax.broadcasted_iota(jnp.int32, (st, st), 1)
        w3 = jnp.where(row >= col, w3, 0.0)
        acc = acc_ref[...] + jnp.dot(w3.astype(jnp.bfloat16), nx_ref[0],
                                     preferred_element_type=jnp.float32)

        dp = out_ref.shape[-1]
        lane = lax.broadcasted_iota(jnp.int32, (1, dp), 1)
        lane_mask = (lane < d_true).astype(jnp.float32)
        g = g_ref[...]
        b = b_ref[...]

        xb = x_ref[0]                                                   # fp32
        tmix = _layernorm(gelu(acc), g, b, lane_mask, d_true)           # token-mixer out
        x1 = xb + tmix
        n1 = _layernorm(x1, g, b, lane_mask, d_true)

        hid = jnp.dot(n1.astype(jnp.bfloat16), fw1_ref[...],
                      preferred_element_type=jnp.float32)
        hid = gelu(hid + fb1_ref[...])
        fm = jnp.dot(hid.astype(jnp.bfloat16), fw2_ref[...],
                     preferred_element_type=jnp.float32) + fb2_ref[...]

        out_ref[0] = xb + fm


# ------------------------------------ wrapper ------------------------------------
def hypermixer_layer(x, params, *, seq_tile=None, approx_gelu=None):
    """x: (B, S, D) fp32.  params: natural-shape weights, Linear weights as (in, out)."""
    B, S, D = x.shape
    dI = params["h1_w1"].shape[1]

    kind = _device_kind()
    if seq_tile is None:
        seq_tile = _default_seq_tile(kind)
    if approx_gelu is None:
        approx_gelu = "v5" in kind

    f32, bf16 = jnp.float32, jnp.bfloat16
    Dp = _round_up(D, 128)
    dIp = _round_up(dI, 128)

    St = seq_tile if S >= seq_tile else _round_up(S, 16)
    # Shrink the tile until both kernels' (single-buffered-weight) working set fits
    # ~87.5% of this chip's physical VMEM (matters on v7x: 64 MiB per TensorCore).
    cap = int(0.875 * _physical_vmem_bytes())
    while St > 128:
        need = max(_working_set(_blocks_a(St, Dp, dIp)),
                   _working_set(_blocks_b(St, Dp, dIp)))
        if int(1.5 * need) <= cap:
            break
        St = max(128, _round_up(St // 2, 8))
    Sp = _round_up(S, St)
    n_s = Sp // St

    def pad2(a, r, c):
        a = a.astype(f32)
        return jnp.pad(a, ((0, r - a.shape[0]), (0, c - a.shape[1])))

    def pad_vec(v, n):                           # (k,) -> (1, n), zero padded
        v = v.astype(f32).reshape(1, -1)
        return jnp.pad(v, ((0, 0), (0, n - v.shape[1])))

    # Zero-padded gamma/beta keep the padded feature lanes exactly zero.
    g = pad_vec(params["ln_g"], Dp)
    b = pad_vec(params["ln_b"], Dp)

    # Fused first-layer weight/bias of the two hyper-MLPs: (Dp, 2*dIp).
    w12a = jnp.zeros((Dp, 2 * dIp), f32)
    w12a = w12a.at[:D, :dI].set(params["h1_w1"].astype(f32))
    w12a = w12a.at[:D, dIp:dIp + dI].set(params["h2_w1"].astype(f32))
    b12a = jnp.zeros((1, 2 * dIp), f32)
    b12a = b12a.at[0, :dI].set(params["h1_b1"].astype(f32))
    b12a = b12a.at[0, dIp:dIp + dI].set(params["h2_b1"].astype(f32))

    h1w2 = pad2(params["h1_w2"], dIp, Dp)
    h2w2 = pad2(params["h2_w2"], dIp, Dp)
    h1b2 = pad_vec(params["h1_b2"], Dp)
    h2b2 = pad_vec(params["h2_b2"], Dp)
    fw1 = pad2(params["fm_w1"], Dp, dIp)
    fb1 = pad_vec(params["fm_b1"], dIp)
    fw2 = pad2(params["fm_w2"], dIp, Dp)
    fb2 = pad_vec(params["fm_b2"], Dp)

    # bf16 matmul operands (fp32 accumulation inside the kernels).
    w12a, h1w2, h2w2, fw1, fw2 = (w.astype(bf16) for w in (w12a, h1w2, h2w2, fw1, fw2))

    xp = jnp.pad(x.astype(f32), ((0, 0), (0, Sp - S), (0, Dp - D)))

    # ---------------- Kernel A: nx, W1, W2 ----------------
    def const_a(shape):
        nd = len(shape)
        # grid-invariant -> single-buffered (no wasted double-buffer VMEM)
        return pl.BlockSpec(shape, lambda bi, si: (0,) * nd,
                            pipeline_mode=pl.Buffered(1))

    a_in_specs = [
        pl.BlockSpec((1, St, Dp), lambda bi, si: (bi, si, 0)),          # x
        const_a((1, Dp)), const_a((1, Dp)),                             # ln g, b
        const_a((Dp, 2 * dIp)), const_a((1, 2 * dIp)),                  # fused fc1
        const_a((dIp, Dp)), const_a((1, Dp)),                           # h1 fc2
        const_a((dIp, Dp)), const_a((1, Dp)),                           # h2 fc2
    ]
    a_out_specs = [pl.BlockSpec((1, St, Dp), lambda bi, si: (bi, si, 0))] * 3
    a_out_shape = [jax.ShapeDtypeStruct((B, Sp, Dp), bf16)] * 3

    vmem_a = _vmem_request(_blocks_a(St, Dp, dIp), cap)

    nx, w1, w2 = pl.pallas_call(
        functools.partial(_hyper_mlp_kernel, d_true=D, d_inner_p=dIp,
                          approx_gelu=approx_gelu),
        out_shape=a_out_shape,
        grid_spec=pltpu.PrefetchScalarGridSpec(
            num_scalar_prefetch=0,
            grid=(B, n_s),
            in_specs=a_in_specs,
            out_specs=a_out_specs),
        compiler_params=pltpu.CompilerParams(
            dimension_semantics=("parallel", "parallel"),
            vmem_limit_bytes=vmem_a),
    )(xp, g, b, w12a, b12a, h1w2, h1b2, h2w2, h2b2)

    # ---------------- Kernel B: causal mixer + feature mixer ----------------
    # Flattened lower-triangular grid: flat step -> (q_block, k_block) via SMEM
    # scalar-prefetch tables.  No dead (k > q) grid steps, no index clamping.
    q_idx, k_idx = [], []
    for qi in range(n_s):
        for ki in range(qi + 1):
            q_idx.append(qi)
            k_idx.append(ki)
    q_tab = jnp.asarray(q_idx, dtype=jnp.int32)
    k_tab = jnp.asarray(k_idx, dtype=jnp.int32)
    n_tri = len(q_idx)

    def qrow_map(bi, t, qtab, ktab):
        return (bi, qtab[t], 0)

    def krow_map(bi, t, qtab, ktab):
        return (bi, ktab[t], 0)

    def const_b(shape):
        nd = len(shape)
        return pl.BlockSpec(shape, lambda bi, t, qtab, ktab: (0,) * nd,
                            pipeline_mode=pl.Buffered(1))

    b_in_specs = [
        pl.BlockSpec((1, St, Dp), qrow_map),                            # x   (query rows)
        pl.BlockSpec((1, St, Dp), qrow_map),                            # W1  (query rows)
        pl.BlockSpec((1, St, Dp), krow_map),                            # W2  (key rows)
        pl.BlockSpec((1, St, Dp), krow_map),                            # nx  (key rows)
        const_b((1, Dp)), const_b((1, Dp)),                             # ln g, b
        const_b((Dp, dIp)), const_b((1, dIp)),                          # fm fc1
        const_b((dIp, Dp)), const_b((1, Dp)),                           # fm fc2
    ]
    b_out_spec = pl.BlockSpec((1, St, Dp), qrow_map)

    vmem_b = _vmem_request(_blocks_b(St, Dp, dIp), cap)

    out = pl.pallas_call(
        functools.partial(_mixer_kernel, d_true=D, approx_gelu=approx_gelu),
        out_shape=jax.ShapeDtypeStruct((B, Sp, Dp), f32),
        grid_spec=pltpu.PrefetchScalarGridSpec(
            num_scalar_prefetch=2,
            grid=(B, n_tri),
            in_specs=b_in_specs,
            out_specs=b_out_spec,
            scratch_shapes=[pltpu.VMEM((St, Dp), jnp.float32)]),
        compiler_params=pltpu.CompilerParams(
            dimension_semantics=("parallel", "arbitrary"),
            vmem_limit_bytes=vmem_b),
    )(q_tab, k_tab, xp, w1, w2, nx, g, b, fw1, fb1, fw2, fb2)

    return out[:, :S, :D]


# ---------------- pure-JAX fp32 reference (true module semantics) ----------------
def _ref_forward(x, p):
    def ln(v):
        mu = jnp.mean(v, -1, keepdims=True)
        var = jnp.mean((v - mu) ** 2, -1, keepdims=True)
        return (v - mu) / jnp.sqrt(var + 1e-5) * p["ln_g"] + p["ln_b"]

    def mlp(v, w1, b1, w2, b2):
        h = jax.nn.gelu(v @ w1 + b1, approximate=False)
        return h @ w2 + b2

    nx = ln(x)
    w1 = mlp(nx, p["h1_w1"], p["h1_b1"], p["h1_w2"], p["h1_b2"])
    w2 = mlp(nx, p["h2_w1"], p["h2_b1"], p["h2_w2"], p["h2_b2"])
    w3 = jnp.einsum("bzn,bsn->bzs", w1, w2)
    S = x.shape[1]
    w3 = w3 * jnp.tril(jnp.ones((S, S), jnp.float32))
    t = jnp.einsum("bzs,bsm->bzm", w3, nx)
    t = ln(jax.nn.gelu(t, approximate=False))
    x1 = x + t
    return x + mlp(ln(x1), p["fm_w1"], p["fm_b1"], p["fm_w2"], p["fm_b2"])


def _init_params(key, d_model, d_inner):
    ks = jax.random.split(key, 12)
    s = 0.02
    w = lambda k, shape: jax.random.normal(k, shape, jnp.float32) * s
    return {
        "ln_g": jnp.ones((d_model,), jnp.float32),
        "ln_b": jnp.zeros((d_model,), jnp.float32),
        # (in, out) layout == transposed PyTorch nn.Linear.weight
        "h1_w1": w(ks[0], (d_model, d_inner)), "h1_b1": w(ks[1], (d_inner,)),
        "h1_w2": w(ks[2], (d_inner, d_model)), "h1_b2": w(ks[3], (d_model,)),
        "h2_w1": w(ks[4], (d_model, d_inner)), "h2_b1": w(ks[5], (d_inner,)),
        "h2_w2": w(ks[6], (d_inner, d_model)), "h2_b2": w(ks[7], (d_model,)),
        "fm_w1": w(ks[8], (d_model, d_inner)), "fm_b1": w(ks[9], (d_inner,)),
        "fm_w2": w(ks[10], (d_inner, d_model)), "fm_b2": w(ks[11], (d_model,)),
    }


if __name__ == "__main__":
    key = jax.random.PRNGKey(0)
    kx, kp, kx2 = jax.random.split(key, 3)

    # Test 1: small single-tile case (B=2, S=16, d_model=32, d_inner=64).
    B, S, D, DI = 2, 16, 32, 64
    x = jax.random.normal(kx, (B, S, D), jnp.float32)
    params = _init_params(kp, D, DI)
    out = jax.block_until_ready(hypermixer_layer(x, params))
    ref = _ref_forward(x, params)
    assert out.shape == (B, S, D)
    assert jnp.allclose(out, ref, atol=1e-2, rtol=1e-2), (
        f"mismatch vs reference (max abs err {float(jnp.max(jnp.abs(out - ref)))})")

    # Test 2: multi-tile triangular-grid path with seq padding (S=40 -> 3 tiles of 16).
    x2 = jax.random.normal(kx2, (B, 40, D), jnp.float32)
    out2 = jax.block_until_ready(hypermixer_layer(x2, params, seq_tile=16))
    ref2 = _ref_forward(x2, params)
    assert out2.shape == (B, 40, D)
    assert jnp.allclose(out2, ref2, atol=1e-2, rtol=1e-2), (
        f"tiled mismatch vs reference (max abs err {float(jnp.max(jnp.abs(out2 - ref2)))})")

    print("KERNEL_OK")
</pallas_src>

<mosaic_0001>
module attributes {stable_mosaic.version = 11 : i64} {
  func.func @_hyper_mlp_kernel(%arg0: i32, %arg1: i32, %arg2: memref<1x16x128xf32, #tpu.memory_space<vmem>>, %arg3: memref<1x128xf32, #tpu.memory_space<vmem>>, %arg4: memref<1x128xf32, #tpu.memory_space<vmem>>, %arg5: memref<128x256xbf16, #tpu.memory_space<vmem>>, %arg6: memref<1x256xf32, #tpu.memory_space<vmem>>, %arg7: memref<128x128xbf16, #tpu.memory_space<vmem>>, %arg8: memref<1x128xf32, #tpu.memory_space<vmem>>, %arg9: memref<128x128xbf16, #tpu.memory_space<vmem>>, %arg10: memref<1x128xf32, #tpu.memory_space<vmem>>, %arg11: memref<1x16x128xbf16, #tpu.memory_space<vmem>>, %arg12: memref<1x16x128xbf16, #tpu.memory_space<vmem>>, %arg13: memref<1x16x128xbf16, #tpu.memory_space<vmem>>) attributes {dimension_semantics = [#tpu.dimension_semantics<parallel>, #tpu.dimension_semantics<parallel>], iteration_bounds = array<i64: 2, 1>, scalar_prefetch = 0 : i64, scratch_operands = 0 : i64, tpu.core_type = #tpu.core_type<tc>, window_params = [{transform_indices = @transform_0, window_bounds = array<i64: 1, 16, 128>}, {pipeline_mode = #tpu.pipeline_mode<synchronous>, transform_indices = @transform_1, window_bounds = array<i64: 1, 128>}, {pipeline_mode = #tpu.pipeline_mode<synchronous>, transform_indices = @transform_2, window_bounds = array<i64: 1, 128>}, {pipeline_mode = #tpu.pipeline_mode<synchronous>, transform_indices = @transform_3, window_bounds = array<i64: 128, 256>}, {pipeline_mode = #tpu.pipeline_mode<synchronous>, transform_indices = @transform_4, window_bounds = array<i64: 1, 256>}, {pipeline_mode = #tpu.pipeline_mode<synchronous>, transform_indices = @transform_5, window_bounds = array<i64: 128, 128>}, {pipeline_mode = #tpu.pipeline_mode<synchronous>, transform_indices = @transform_6, window_bounds = array<i64: 1, 128>}, {pipeline_mode = #tpu.pipeline_mode<synchronous>, transform_indices = @transform_7, window_bounds = array<i64: 128, 128>}, {pipeline_mode = #tpu.pipeline_mode<synchronous>, transform_indices = @transform_8, window_bounds = array<i64: 1, 128>}, {transform_indices = @transform_9, window_bounds = array<i64: 1, 16, 128>}, {transform_indices = @transform_10, window_bounds = array<i64: 1, 16, 128>}, {transform_indices = @transform_11, window_bounds = array<i64: 1, 16, 128>}]} {
    %0 = tpu.iota {dimensions = array<i32: 1>} : vector<1x128xi32>
    %c32_i32 = arith.constant 32 : i32
    %1 = vector.broadcast %c32_i32 : i32 to vector<1x128xi32>
    %2 = arith.cmpi slt, %0, %1 : vector<1x128xi32>
    %3 = arith.extui %2 : vector<1x128xi1> to vector<1x128xi32>
    %4 = arith.sitofp %3 : vector<1x128xi32> to vector<1x128xf32>
    %c0 = arith.constant 0 : index
    %c0_0 = arith.constant 0 : index
    %5 = vector.load %arg3[%c0, %c0_0] : memref<1x128xf32, #tpu.memory_space<vmem>>, vector<1x128xf32>
    %c0_1 = arith.constant 0 : index
    %c0_2 = arith.constant 0 : index
    %6 = vector.load %arg4[%c0_1, %c0_2] : memref<1x128xf32, #tpu.memory_space<vmem>>, vector<1x128xf32>
    %c0_3 = arith.constant 0 : index
    %c0_4 = arith.constant 0 : index
    %c0_5 = arith.constant 0 : index
    %7 = vector.load %arg2[%c0_3, %c0_4, %c0_5] : memref<1x16x128xf32, #tpu.memory_space<vmem>>, vector<1x16x128xf32>
    %8 = vector.shape_cast %7 : vector<1x16x128xf32> to vector<16x128xf32>
    %cst = arith.constant dense<0.000000e+00> : vector<16xf32>
    %9 = vector.multi_reduction <add>, %8, %cst [1] : vector<16x128xf32> to vector<16xf32>
    %10 = vector.shape_cast %9 : vector<16xf32> to vector<16x1xf32>
    %cst_6 = arith.constant 3.125000e-02 : f32
    %11 = vector.broadcast %cst_6 : f32 to vector<16x1xf32>
    %12 = arith.mulf %10, %11 : vector<16x1xf32>
    %13 = vector.broadcast %12 : vector<16x1xf32> to vector<16x128xf32>
    %14 = arith.subf %8, %13 : vector<16x128xf32>
    %15 = vector.broadcast %4 : vector<1x128xf32> to vector<16x128xf32>
    %16 = arith.mulf %14, %15 : vector<16x128xf32>
    %17 = arith.mulf %16, %16 : vector<16x128xf32>
    %cst_7 = arith.constant dense<0.000000e+00> : vector<16xf32>
    %18 = vector.multi_reduction <add>, %17, %cst_7 [1] : vector<16x128xf32> to vector<16xf32>
    %19 = vector.shape_cast %18 : vector<16xf32> to vector<16x1xf32>
    %cst_8 = arith.constant 3.125000e-02 : f32
    %20 = vector.broadcast %cst_8 : f32 to vector<16x1xf32>
    %21 = arith.mulf %19, %20 : vector<16x1xf32>
    %cst_9 = arith.constant 9.99999974E-6 : f32
    %22 = vector.broadcast %cst_9 : f32 to vector<16x1xf32>
    %23 = arith.addf %21, %22 : vector<16x1xf32>
    %24 = math.rsqrt %23 : vector<16x1xf32>
    %25 = vector.broadcast %24 : vector<16x1xf32> to vector<16x128xf32>
    %26 = arith.mulf %16, %25 : vector<16x128xf32>
    %27 = vector.broadcast %5 : vector<1x128xf32> to vector<16x128xf32>
    %28 = arith.mulf %26, %27 : vector<16x128xf32>
    %29 = vector.broadcast %6 : vector<1x128xf32> to vector<16x128xf32>
    %30 = arith.addf %28, %29 : vector<16x128xf32>
    %31 = arith.truncf %30 : vector<16x128xf32> to vector<16x128xbf16>
    %c0_10 = arith.constant 0 : index
    %c0_11 = arith.constant 0 : index
    %32 = vector.load %arg5[%c0_10, %c0_11] : memref<128x256xbf16, #tpu.memory_space<vmem>>, vector<128x256xbf16>
    %cst_12 = arith.constant dense<0.000000e+00> : vector<16x256xf32>
    %33 = tpu.matmul %31, %32, %cst_12 {dimension_numbers = #tpu.dot_dimension_numbers<[1], [0], [0], [1], [0, 0, 1, 1], [], []>} : vector<16x128xbf16>, vector<128x256xbf16>, vector<16x256xf32> -> vector<16x256xf32>
    %c0_13 = arith.constant 0 : index
    %c0_14 = arith.constant 0 : index
    %34 = vector.load %arg6[%c0_13, %c0_14] : memref<1x256xf32, #tpu.memory_space<vmem>>, vector<1x256xf32>
    %35 = vector.broadcast %34 : vector<1x256xf32> to vector<16x256xf32>
    %36 = arith.addf %33, %35 : vector<16x256xf32>
    %cst_15 = arith.constant 5.000000e-01 : f32
    %37 = vector.broadcast %cst_15 : f32 to vector<16x256xf32>
    %38 = arith.mulf %37, %36 : vector<16x256xf32>
    %cst_16 = arith.constant 0.707106769 : f32
    %39 = vector.broadcast %cst_16 : f32 to vector<16x256xf32>
    %40 = arith.mulf %36, %39 : vector<16x256xf32>
    %41 = math.erf %40 : vector<16x256xf32>
    %cst_17 = arith.constant 1.000000e+00 : f32
    %42 = vector.broadcast %cst_17 : f32 to vector<16x256xf32>
    %43 = arith.addf %42, %41 : vector<16x256xf32>
    %44 = arith.mulf %38, %43 : vector<16x256xf32>
    %45 = arith.truncf %44 : vector<16x256xf32> to vector<16x256xbf16>
    %46 = vector.extract_strided_slice %45 {offsets = [0, 0], sizes = [16, 128], strides = [1, 1]} : vector<16x256xbf16> to vector<16x128xbf16>
    %c0_18 = arith.constant 0 : index
    %c0_19 = arith.constant 0 : index
    %47 = vector.load %arg7[%c0_18, %c0_19] : memref<128x128xbf16, #tpu.memory_space<vmem>>, vector<128x128xbf16>
    %cst_20 = arith.constant dense<0.000000e+00> : vector<16x128xf32>
    %48 = tpu.matmul %46, %47, %cst_20 {dimension_numbers = #tpu.dot_dimension_numbers<[1], [0], [0], [1], [0, 0, 1, 1], [], []>} : vector<16x128xbf16>, vector<128x128xbf16>, vector<16x128xf32> -> vector<16x128xf32>
    %c0_21 = arith.constant 0 : index
    %c0_22 = arith.constant 0 : index
    %49 = vector.load %arg8[%c0_21, %c0_22] : memref<1x128xf32, #tpu.memory_space<vmem>>, vector<1x128xf32>
    %50 = vector.broadcast %49 : vector<1x128xf32> to vector<16x128xf32>
    %51 = arith.addf %48, %50 : vector<16x128xf32>
    %52 = vector.extract_strided_slice %45 {offsets = [0, 128], sizes = [16, 128], strides = [1, 1]} : vector<16x256xbf16> to vector<16x128xbf16>
    %c0_23 = arith.constant 0 : index
    %c0_24 = arith.constant 0 : index
    %53 = vector.load %arg9[%c0_23, %c0_24] : memref<128x128xbf16, #tpu.memory_space<vmem>>, vector<128x128xbf16>
    %cst_25 = arith.constant dense<0.000000e+00> : vector<16x128xf32>
    %54 = tpu.matmul %52, %53, %cst_25 {dimension_numbers = #tpu.dot_dimension_numbers<[1], [0], [0], [1], [0, 0, 1, 1], [], []>} : vector<16x128xbf16>, vector<128x128xbf16>, vector<16x128xf32> -> vector<16x128xf32>
    %c0_26 = arith.constant 0 : index
    %c0_27 = arith.constant 0 : index
    %55 = vector.load %arg10[%c0_26, %c0_27] : memref<1x128xf32, #tpu.memory_space<vmem>>, vector<1x128xf32>
    %56 = vector.broadcast %55 : vector<1x128xf32> to vector<16x128xf32>
    %57 = arith.addf %54, %56 : vector<16x128xf32>
    %c0_28 = arith.constant 0 : index
    %c0_29 = arith.constant 0 : index
    %c0_30 = arith.constant 0 : index
    %58 = vector.load %arg11[%c0_28, %c0_29, %c0_30] : memref<1x16x128xbf16, #tpu.memory_space<vmem>>, vector<1x16x128xbf16>
    %59 = vector.shape_cast %58 : vector<1x16x128xbf16> to vector<16x128xbf16>
    %60 = vector.shape_cast %31 : vector<16x128xbf16> to vector<1x16x128xbf16>
    tpu.vector_store %arg11[%c0_28, %c0_29, %c0_30], %60 {strides = array<i32>} : memref<1x16x128xbf16, #tpu.memory_space<vmem>>, vector<1x16x128xbf16>,
    %61 = arith.truncf %51 : vector<16x128xf32> to vector<16x128xbf16>
    %c0_31 = arith.constant 0 : index
    %c0_32 = arith.constant 0 : index
    %c0_33 = arith.constant 0 : index
    %62 = vector.load %arg12[%c0_31, %c0_32, %c0_33] : memref<1x16x128xbf16, #tpu.memory_space<vmem>>, vector<1x16x128xbf16>
    %63 = vector.shape_cast %62 : vector<1x16x128xbf16> to vector<16x128xbf16>
    %64 = vector.shape_cast %61 : vector<16x128xbf16> to vector<1x16x128xbf16>
    tpu.vector_store %arg12[%c0_31, %c0_32, %c0_33], %64 {strides = array<i32>} : memref<1x16x128xbf16, #tpu.memory_space<vmem>>, vector<1x16x128xbf16>,
    %65 = arith.truncf %57 : vector<16x128xf32> to vector<16x128xbf16>
    %c0_34 = arith.constant 0 : index
    %c0_35 = arith.constant 0 : index
    %c0_36 = arith.constant 0 : index
    %66 = vector.load %arg13[%c0_34, %c0_35, %c0_36] : memref<1x16x128xbf16, #tpu.memory_space<vmem>>, vector<1x16x128xbf16>
    %67 = vector.shape_cast %66 : vector<1x16x128xbf16> to vector<16x128xbf16>
    %68 = vector.shape_cast %65 : vector<16x128xbf16> to vector<1x16x128xbf16>
    tpu.vector_store %arg13[%c0_34, %c0_35, %c0_36], %68 {strides = array<i32>} : memref<1x16x128xbf16, #tpu.memory_space<vmem>>, vector<1x16x128xbf16>,
    return
  }
  func.func @transform_0(%arg0: i32, %arg1: i32) -> (i32, i32, i32) {
    %c0_i32 = arith.constant 0 : i32
    %c0_i32_0 = arith.constant 0 : i32
    return %arg0, %arg1, %c0_i32 : i32, i32, i32
  }
  func.func @transform_1(%arg0: i32, %arg1: i32) -> (i32, i32) {
    %c0_i32 = arith.constant 0 : i32
    %c0_i32_0 = arith.constant 0 : i32
    %c0_i32_1 = arith.constant 0 : i32
    return %c0_i32, %c0_i32_0 : i32, i32
  }
  func.func @transform_2(%arg0: i32, %arg1: i32) -> (i32, i32) {
    %c0_i32 = arith.constant 0 : i32
    %c0_i32_0 = arith.constant 0 : i32
    %c0_i32_1 = arith.constant 0 : i32
    return %c0_i32, %c0_i32_0 : i32, i32
  }
  func.func @transform_3(%arg0: i32, %arg1: i32) -> (i32, i32) {
    %c0_i32 = arith.constant 0 : i32
    %c0_i32_0 = arith.constant 0 : i32
    %c0_i32_1 = arith.constant 0 : i32
    return %c0_i32, %c0_i32_0 : i32, i32
  }
  func.func @transform_4(%arg0: i32, %arg1: i32) -> (i32, i32) {
    %c0_i32 = arith.constant 0 : i32
    %c0_i32_0 = arith.constant 0 : i32
    %c0_i32_1 = arith.constant 0 : i32
    return %c0_i32, %c0_i32_0 : i32, i32
  }
  func.func @transform_5(%arg0: i32, %arg1: i32) -> (i32, i32) {
    %c0_i32 = arith.constant 0 : i32
    %c0_i32_0 = arith.constant 0 : i32
    %c0_i32_1 = arith.constant 0 : i32
    return %c0_i32, %c0_i32_0 : i32, i32
  }
  func.func @transform_6(%arg0: i32, %arg1: i32) -> (i32, i32) {
    %c0_i32 = arith.constant 0 : i32
    %c0_i32_0 = arith.constant 0 : i32
    %c0_i32_1 = arith.constant 0 : i32
    return %c0_i32, %c0_i32_0 : i32, i32
  }
  func.func @transform_7(%arg0: i32, %arg1: i32) -> (i32, i32) {
    %c0_i32 = arith.constant 0 : i32
    %c0_i32_0 = arith.constant 0 : i32
    %c0_i32_1 = arith.constant 0 : i32
    return %c0_i32, %c0_i32_0 : i32, i32
  }
  func.func @transform_8(%arg0: i32, %arg1: i32) -> (i32, i32) {
    %c0_i32 = arith.constant 0 : i32
    %c0_i32_0 = arith.constant 0 : i32
    %c0_i32_1 = arith.constant 0 : i32
    return %c0_i32, %c0_i32_0 : i32, i32
  }
  func.func @transform_9(%arg0: i32, %arg1: i32) -> (i32, i32, i32) {
    %c0_i32 = arith.constant 0 : i32
    %c0_i32_0 = arith.constant 0 : i32
    return %arg0, %arg1, %c0_i32 : i32, i32, i32
  }
  func.func @transform_10(%arg0: i32, %arg1: i32) -> (i32, i32, i32) {
    %c0_i32 = arith.constant 0 : i32
    %c0_i32_0 = arith.constant 0 : i32
    return %arg0, %arg1, %c0_i32 : i32, i32, i32
  }
  func.func @transform_11(%arg0: i32, %arg1: i32) -> (i32, i32, i32) {
    %c0_i32 = arith.constant 0 : i32
    %c0_i32_0 = arith.constant 0 : i32
    return %arg0, %arg1, %c0_i32 : i32, i32, i32
  }
}

</mosaic_0001>

<bundles_post_ra>
// kernel: tpu_custom_call.1
= control target key start
LH: loop header
LB: loop body
LE: loop exit
PB: predicated region body
PF: predicated region fallthrough
CT: control target
= control target key end

     0   :  { %s2469_s0 = inlined_call_operand.hbm [shape: f32[2,16,128], index: 0, kind: input, shape index: {}]   ;;  %s2470_s1 = inlined_call_operand.hbm [shape: f32[1,128], index: 1, kind: input, shape index: {}]   ;;  %s2471_s2 = inlined_call_operand.vmem [shape: f32[1,128], index: 2, kind: input, shape index: {}]   ;;  %s2472_s3 = inlined_call_operand.hbm [shape: bf16[128,256], index: 3, kind: input, shape index: {}]   ;;  %s2473_s4 = inlined_call_operand.vmem [shape: f32[1,256], index: 4, kind: input, shape index: {}]   ;;  %s2474_s5 = inlined_call_operand.hbm [shape: bf16[128,128], index: 5, kind: input, shape index: {}]   ;;  %s2475_s6 = inlined_call_operand.vmem [shape: f32[1,128], index: 6, kind: input, shape index: {}]   ;;  %s2476_s7 = inlined_call_operand.hbm [shape: bf16[128,128], index: 7, kind: input, shape index: {}]   ;;  %s2477_s8 = inlined_call_operand.vmem [shape: f32[1,128], index: 8, kind: input, shape index: {}]   ;;  %s2478_s9 = inlined_call_operand.hbm [shape: bf16[2,16,128], index: 9, kind: output, shape index: {0}]   ;;  %s2479_s10 = inlined_call_operand.hbm [shape: bf16[2,16,128], index: 10, kind: output, shape index: {1}]   ;;  %s2480_s11 = inlined_call_operand.hbm [shape: bf16[2,16,128], index: 11, kind: output, shape index: {2}]  }
   0x1   :  { %2488 = sst [smem:[#allocation23_spill]] %s2469_s0 }
   0x2   :  { %2489 = sst [smem:[#allocation24_spill]] %s2470_s1 }
   0x3   :  { %2490 = sst [smem:[#allocation25_spill]] %s2472_s3 }
   0x4   :  { %2491 = sst [smem:[#allocation26_spill]] %s2474_s5 }
   0x5   :  { %2492 = sst [smem:[#allocation27_spill]] %s2476_s7 }
   0x6   :  { %2493 = sst [smem:[#allocation28_spill]] %s2480_s11 }
   0x7   :  { %17 = vsyncpa [#allocation3], 0 }
   0x8   :  { %19 = vsyncpa [#allocation3 + $0x1], 0 }
   0x9   :  { %20 = vsyncpa [#allocation6], 0 }
   0xa   :  { %21 = vsyncpa [#allocation9], 0 }
   0xb   :  { %22 = vsyncpa [#allocation4], 0 }
   0xc   :  { %24 = vsyncpa [#allocation4 + $0x1], 0 }
   0xd   :  { %25 = vsyncpa [#allocation13], 0 }
   0xe   :  { %27 = vsyncpa [#allocation13 + $0x1], 0  ;;  %s2060_s17 = smov 0   ;;  %s2062_s18 = smov 0  }
   0xf   :  { %s2064_s19 = smov 0   ;;  %s2066_s20 = smov 0  }
  0x10   :  { %s2068_s21 = smov 0   ;;  %s2070_s22 = smov 0  }
  0x11 LB: > { %2494 = sst [smem:[#allocation20_spill]] %s1967_s17  ;;  %s2091_s23 = sadd.s32 4294967295, %s1987_s22   ;;  %s1987_s22 = sphi %s2070_s22, %s33_s22   ;;  %s1983_s21 = sphi %s2068_s21, %s2522_s21   ;;  %s1979_s20 = sphi %s2066_s20, %s2521_s20   ;;  %s1975_s19 = sphi %s2064_s19, %s2520_s19   ;;  %s1971_s18 = sphi %s2062_s18, %s2519_s18   ;;  %s1967_s17 = sphi %s2060_s17, %s2518_s17  }
  0x12   : > { %s2481_s24 = sadd.s32 4294967294, %s1987_s22   ;;  %p67_p0 = scmp.ne.s32.totalorder %s1971_s18, %s1967_s17 }
  0x13   : > { %p68_p1 = scmp.eq.s32.totalorder %s2091_s23, 0  ;;  %p267_p2 = scmp.eq.s32.totalorder %s2481_s24, 1 }
  0x14   : > { %p1338_p4 = scmp.ge.s32.totalorder %s1987_s22, 1  ;;  %p330_p6 = scmp.lt.s32.totalorder %s1987_s22, 3 }
  0x15   : > { %p2101_p3 = por %p68_p1, %p67_p0  ;;  %p2106_p5 = por %p267_p2, %p67_p0 }
  0x16   : > { %s2498_s1 = sld [smem:[#allocation24_spill]]  ;;  %p2114_p7 = pnand %p1338_p4, %p330_p6 }
  0x17   : > { %s2496_s26 = scalar_select %p2106_p5, 1, 0 }
  0x18   : > { %p1343_p8 = scmp.ge.s32.totalorder %s1987_s22, 2  ;;  %p1575_p9 = pneg %p2114_p7 }
  0x19   : > { %2497 = sst [smem:[#allocation21_spill]] %s2496_s26  ;;  %s1989_s12 = smov [#allocation5]  }
  0x1a   : > { %s344_s13 = sshll.u32 %s1989_s12, 4  ;;  %s2500_s5 = sld [smem:[#allocation26_spill]]  ;;  %s345_s13 = int_to_ptr.vmem [resolvable:$true] %s344_s13 }
  0x1b   : > { %p2126_p10 = pnand %p1575_p9, %p68_p1  ;;  %s1990_s28 = smov [#allocation8]  }
  0x1c   : > { %s342_s29 = sshll.u32 %s2498_s1, 4  ;;  %s375_s24 = sshll.u32 %s1990_s28, 4  ;;  %s343_s29 = int_to_ptr.hbm [resolvable:$true] %s342_s29  ;;  %s376_s24 = int_to_ptr.vmem [resolvable:$true] %s375_s24 }
  0x1d   : > { %1578 = dma.hbm_to_vmem [thread:$0]  (!%p2126_p10), %s343_s29, 16, %s345_s13, [#allocation6]  }
  0x1e   : > { %s1991_s12 = smov 64   ;;  %s1992_s1 = smov 4  }
  0x1f   : > { %s2502_s3 = sld [smem:[#allocation25_spill]]  ;;  %s1993_s26 = smov [#allocation7]  }
  0x20   : > { %s373_s16 = sshll.u32 %s2500_s5, 4  ;;  %s358_s28 = sshll.u32 %s1993_s26, 4  ;;  %s374_s16 = int_to_ptr.hbm [resolvable:$true] %s373_s16  ;;  %s359_s28 = int_to_ptr.vmem [resolvable:$true] %s358_s28 }
  0x21   : > { %1584 = dma.hbm_to_vmem [thread:$0]  (!%p2126_p10), %s374_s16, 1024, %s376_s24, [#allocation9], %s1991_s12, %s1991_s12, %s1992_s1  }
  0x22   : > { %s2503_s7 = sld [smem:[#allocation27_spill]]  ;;  %s2485_s11 = smov 128  }
  0x23   : > { %s2486_s24 = smov 8   ;;  %s1996_s16 = smov [#allocation10]  }
  0x24   : > { %s392_s14 = sshll.u32 %s1996_s16, 4  ;;  %p261_p11 = scmp.eq.s32.totalorder %s2091_s23, 1  ;;  %s393_s14 = int_to_ptr.vmem [resolvable:$true] %s392_s14 }
  0x25   : > { %s356_s5 = sshll.u32 %s2502_s3, 4  ;;  %s45_s26 = sadd.s32 1, %s1983_s21  ;;  %s357_s5 = int_to_ptr.hbm [resolvable:$true] %s356_s5 }
  0x26   : > { %1581 = dma.hbm_to_vmem [thread:$0]  (!%p2126_p10), %s357_s5, 2048, %s359_s28, [#allocation6], %s2485_s11, %s2485_s11, %s2486_s24  }
  0x27   : > { %p47_p12 = scmp.ge.s32.totalorder %s45_s26, 2  ;;  %s54_s15 = sadd.s32 1, %s1975_s19 }
  0x28   : > { %s390_s17 = sshll.u32 %s2503_s7, 4  ;;  %p61_p13 = scmp.ne.s32.totalorder %s1975_s19, %s1971_s18  ;;  %s391_s17 = int_to_ptr.hbm [resolvable:$true] %s390_s17 }
  0x29   : > { %1587 = dma.hbm_to_vmem [thread:$0]  (!%p2126_p10), %s391_s17, 1024, %s393_s14, [#allocation9], %s1991_s12, %s1991_s12, %s1992_s1  }
  0x2a   : > { %p62_p0 = scmp.eq.s32.totalorder %s1987_s22, 0  ;;  %s2524_s26 = smov (%p47_p12, %s45_s26), 0 }
  0x2b   : > { %2504 = sst [smem:[#allocation22_spill]] %s2524_s26  ;;  %p2155_p2 = por %p261_p11, %p61_p13 }
  0x2c   : > { %p1606_p4 = scmp.lt.s32.totalorder %s1987_s22, 2  ;;  %s49_s28 = ssub.s32 %s1983_s21, %s2524_s26 }
  0x2d   : > { %s409_s27 = sand.u32 1, %s1975_s19   ;;  %p52_p6 = scmp.eq.s32.totalorder %s49_s28, 0 }
  0x2e   : > { %p63_p9 = por %p62_p0, %p61_p13  ;;  %s1344_s1 = sshll.u32 %s409_s27, 4 }
  0x2f   : > { %s1500_s17 = sshll.u32 %s1983_s21, 4  ;;  %s2506_s0 = sld [smem:[#allocation23_spill]] }
  0x30   : > { %s2165_s12 = scalar_select %p52_p6, %s1975_s19, %s54_s15  }
  0x31   : > { %s413_s11 = scalar_lea.vmem [#allocation2], %s1344_s1  ;;  %p1589_p10 = pnand %p1606_p4, %p63_p9 }
  0x32   : > { %s423_s24 = sshll.u32 %s413_s11, 4  ;;  %s410_s3 = scalar_lea.sflag [#allocation3], %s409_s27  ;;  %s424_s24 = int_to_ptr.vmem [resolvable:$true] %s423_s24 }
  0x33   : > { %s2507_s7 = smov 8   ;;  %s2508_s26 = smov 128  }
  0x34   : > { %435 = sbr.rel (%p2114_p7) target bundleno = 700 (0x2bc), region = 56  ;;  %s2178_s15 = sand.u32 (!%p2114_p7), 1, %s1971_s18  }
  0x35   : > { %s420_s16 = scalar_lea.hbm %s2506_s0, %s1500_s17  ;;  %s1348_s28 = sshll.u32 (!%p2114_p7), %s2178_s15, 4 }
  0x36   : > { %s421_s14 = sshll.u32 %s420_s16, 4  ;;  %s438_s11 = scalar_lea.sflag (!%p2114_p7), [#allocation3], %s2178_s15  ;;  %s422_s14 = int_to_ptr.hbm [resolvable:$true] %s421_s14 }
  0x37   : > { %1591 = dma.hbm_to_vmem [thread:$0]  (!%p1589_p10), %s422_s14, 256, %s424_s24, %s410_s3, %s2508_s26, %s2508_s26, %s2507_s7  }
  0x38   : > { %s441_s1 = scalar_lea.vmem (!%p2114_p7), [#allocation2], %s1348_s28 }
  0x39   : > { %1946 = dma.done.wait (%p2101_p3), %s438_s11, 256  }
  0x3a   : > { %1948 = vsyncadd (%p2101_p3), %s438_s11, 4294967040 }
  0x3b   : > { %1950 = dma.done.wait (%p68_p1), [#allocation6], 2064  }
  0x3c   : > { %1952 = vsyncadd (%p68_p1), [#allocation6], 4294965232 }
  0x3d   : > { %1954 = dma.done.wait (%p68_p1), [#allocation9], 2048  }
  0x3e   : > { %1956 = vsyncadd (%p68_p1), [#allocation9], 4294965248  ;;  %v522_v0 = vld [vmem:[%s441_s1] sm:$0xff]  ;;  %v523_v1 = vld [vmem:[%s441_s1 + $0x8] sm:$0xff]  ;;  %v515_v2 = vlaneseq  ;;  %v1997_v6 = vmov 0.0   ;;  %s2208_s25 = sshll.u32 %s2178_s15, 3 }
  0x3f   : > { %524 = vadd.xlane.f32.xlu0 %v522_v0  ;;  %v1415_v16 = vld [vmem:[#allocation7 + $0x70] sm:$0xf]  ;;  %v1516_v17 = vld [vmem:[#allocation7 + $0x74] sm:$0xf0]  ;;  %v1515_v18 = vld [vmem:[#allocation7 + $0x74] sm:$0xf] }
  0x40   : > { %v516_v3 = vand.u32 127, %v515_v2  ;;  %v1416_v19 = vor.u32 %v1516_v17, %v1415_v16  ;;  %v1417_v20 = vld [vmem:[#allocation7 + $0x78] sm:$0xf0]  ;;  %v1407_v22 = vld [vmem:[#allocation7 + $0x60] sm:$0xf]  ;;  %s496_s30 = scalar_lea.vmem [#allocation11], %s2208_s25 }
  0x41   : > { %v1420_v21 = vor.u32 %v1515_v18, %v1417_v20  ;;  %v1514_v23 = vld [vmem:[#allocation7 + $0x64] sm:$0xf0]  ;;  %v1513_v24 = vld [vmem:[#allocation7 + $0x64] sm:$0xf]  ;;  %v1409_v26 = vld [vmem:[#allocation7 + $0x68] sm:$0xf0] }
  0x42   : > { %vm517_vm0 = vcmp.lt.s32.totalorder %v516_v3, 32  ;;  %686 = vmatpush.bf16.msra.mxu0 %v1416_v19  ;;  %v1408_v25 = vor.u32 %v1514_v23, %v1407_v22  ;;  %v1412_v27 = vor.u32 %v1513_v24, %v1409_v26  ;;  %v1399_v28 = vld [vmem:[#allocation7 + $0x50] sm:$0xf]  ;;  %v1512_v29 = vld [vmem:[#allocation7 + $0x54] sm:$0xf0]  ;;  %s2357_s27 = sshll.u32 %s1979_s20, 3 }
  0x43   : > { %v1356_v7 = vsel %vm517_vm0, 1.0, %v1997_v6  ;;  %700 = vmatpush.bf16.msra.mxu1 %v1420_v21  ;;  %v1511_v30 = vld [vmem:[#allocation7 + $0x54] sm:$0xf]  ;;  %v1400_v31 = vor.u32 %v1512_v29, %v1399_v28  ;;  %v1401_v32 = vld [vmem:[#allocation7 + $0x58] sm:$0xf0]  ;;  %s1100_s13 = scalar_lea.hbm %s2478_s9, %s2357_s27  ;;  %s1101_s16 = sshll.u32 %s496_s30, 4  ;;  %s1102_s16 = int_to_ptr.vmem [resolvable:$true] %s1101_s16 }
  0x44   : > { %v1404_v33 = vor.u32 %v1511_v30, %v1401_v32  ;;  %v1391_v34 = vld [vmem:[#allocation7 + $0x40] sm:$0xf]  ;;  %v1510_v35 = vld [vmem:[#allocation7 + $0x44] sm:$0xf0]  ;;  %v1509_v36 = vld [vmem:[#allocation7 + $0x44] sm:$0xf] }
  0x45   : > { %v1392_v37 = vor.u32 %v1510_v35, %v1391_v34  ;;  %v1393_v38 = vld [vmem:[#allocation7 + $0x48] sm:$0xf0]  ;;  %v1383_v40 = vld [vmem:[#allocation7 + $0x30] sm:$0xf]  ;;  %v1508_v41 = vld [vmem:[#allocation7 + $0x34] sm:$0xf0] }
  0x46   : > { %687 = vmatpush.bf16.msra.mxu0 %v1408_v25  ;;  %v1396_v39 = vor.u32 %v1509_v36, %v1393_v38  ;;  %v1507_v42 = vld [vmem:[#allocation7 + $0x34] sm:$0xf]  ;;  %v1384_v43 = vor.u32 %v1508_v41, %v1383_v40  ;;  %v1385_v44 = vld [vmem:[#allocation7 + $0x38] sm:$0xf0]  ;;  %v1375_v46 = vld [vmem:[#allocation7 + $0x20] sm:$0xf] }
  0x47   : > { %526 = vadd.xlane.f32.xlu0 %v523_v1  ;;  %701 = vmatpush.bf16.msra.mxu1 %v1412_v27  ;;  %v1388_v45 = vor.u32 %v1507_v42, %v1385_v44  ;;  %v1506_v47 = vld [vmem:[#allocation7 + $0x24] sm:$0xf0]  ;;  %v1505_v48 = vld [vmem:[#allocation7 + $0x24] sm:$0xf]  ;;  %v1377_v50 = vld [vmem:[#allocation7 + $0x28] sm:$0xf0] }
  0x48   : > { %v1376_v49 = vor.u32 %v1506_v47, %v1375_v46  ;;  %v1380_v51 = vor.u32 %v1505_v48, %v1377_v50  ;;  %v1367_v52 = vld [vmem:[#allocation7 + $0x10] sm:$0xf]  ;;  %v1504_v53 = vld [vmem:[#allocation7 + $0x14] sm:$0xf0]  ;;  %v1503_v54 = vld [vmem:[#allocation7 + $0x14] sm:$0xf] }
  0x49   : > { %v1368_v56 = vor.u32 %v1504_v53, %v1367_v52  ;;  %v1369_v57 = vld [vmem:[#allocation7 + $0x18] sm:$0xf0]  ;;  %v1359_v60 = vld [vmem:[#allocation7] sm:$0xf]  ;;  %v1502_v61 = vld [vmem:[#allocation7 + $0x4] sm:$0xf0] }
  0x4a   : > { %688 = vmatpush.bf16.msra.mxu0 %v1400_v31  ;;  %v1372_v59 = vor.u32 %v1503_v54, %v1369_v57  ;;  %v1501_v62 = vld [vmem:[#allocation7 + $0x4] sm:$0xf]  ;;  %v1361_v63 = vld [vmem:[#allocation7 + $0x8] sm:$0xf0]  ;;  %v1671_v19 = vld [vmem:[#allocation5] ss:$0 sm:$0xff] }
  0x4b   : > { %702 = vmatpush.bf16.msra.mxu1 %v1404_v33  ;;  %v1364_v2 = vor.u32 %v1501_v62, %v1361_v63  ;;  %v1672_v23 = vld [vmem:[%s2471_s2] ss:$0 sm:$0xff]  ;;  %s1103_s14 = sshll.u32 %s1100_s13, 4  ;;  %s1077_s28 = scalar_lea.sflag [#allocation4], %s2178_s15  ;;  %s1104_s14 = int_to_ptr.hbm [resolvable:$true] %s1103_s14 }
  0x4c   : > { %s1851_s11 = sshra.s32 %s1104_s14, 4  ;;  %s1857_s7 = scalar_lea.hbm %s2478_s9, 16  ;;  %s1852_s11 = int_to_ptr.hbm [resolvable:$true] %s1851_s11 }
  0x4d   : > { %s1853_s1 = scalar_lea.hbm %s1852_s11, 8  ;;  %p1858_p11 = scmp.lt.s32.totalorder %s1852_s11, %s2478_s9 }
  0x4e   : > { %689 = vmatpush.bf16.msra.mxu0 %v1392_v37  ;;  %p1854_p1 = scmp.ne.s32.totalorder %s1852_s11, %s1853_s1  ;;  %p1859_p12 = scmp.lt.s32.totalorder %s1857_s7, %s1853_s1 }
  0x4f   : > { %703 = vmatpush.bf16.msra.mxu1 %v1396_v39 }
  0x50   : > { %p1855_p3 = pnand %p1854_p1, %p2155_p2  ;;  %p1860_p13 = por %p1859_p12, %p1858_p11 }
  0x52   : > { %690 = vmatpush.bf16.msra.mxu0 %v1384_v43  ;;  %p1856_p7 = pneg %p1855_p3 }
  0x53   : > { %704 = vmatpush.bf16.msra.mxu1 %v1388_v45 }
  0x54   : > { %p1861_p0 = pnand %p1860_p13, %p1856_p7 }
  0x56   : > { %691 = vmatpush.bf16.msra.mxu0 %v1376_v49 }
  0x57   : > { %705 = vmatpush.bf16.msra.mxu1 %v1380_v51 }
  0x5a   : > { %692 = vmatpush.bf16.msra.mxu0 %v1368_v56 }
  0x5b   : > { %706 = vmatpush.bf16.msra.mxu1 %v1372_v59 }
  0x5f   : > { %707 = vmatpush.bf16.msra.mxu1 %v1364_v2 }
  0xb2   : > { %v525_v4 = vpop.xlane.xlu0 %524 }
  0xb3   : > { %v528_v5 = vmul.f32 0.03125, %v525_v4 }
  0xb5   : > { %v530_v8 = vsub.f32 %v522_v0, %v528_v5 }
  0xb7   : > { %v2194_v9 = vmul.f32 %v1356_v7, %v530_v8 }
  0xb9   : > { %v534_v10 = vmul.f32 %v2194_v9, %v2194_v9 }
  0xba   : > { %v527_v11 = vpop.xlane.xlu0 %526 }
  0xbb   : > { %v529_v12 = vmul.f32 0.03125, %v527_v11  ;;  %536 = vadd.xlane.f32.xlu1 %v534_v10 }
  0xbd   : > { %v531_v13 = vsub.f32 %v523_v1, %v529_v12  ;;  %v1360_v1 = vor.u32 %v1502_v61, %v1359_v60 }
  0xbf   : > { %v2198_v14 = vmul.f32 %v1356_v7, %v531_v13  ;;  %693 = vmatpush.bf16.msra.mxu0 %v1360_v1 }
  0xc1   : > { %v535_v15 = vmul.f32 %v2198_v14, %v2198_v14 }
  0xc3   : > { %538 = vadd.xlane.f32.xlu1 %v535_v15 }
 0x12e   : > { %v537_v55 = vpop.xlane.xlu1 %536 }
 0x12f   : > { %v540_v58 = vmul.f32 0.03125, %v537_v55 }
 0x131   : > { %v542_v0 = vadd.f32 1e-05, %v540_v58 }
 0x133   : > { %1675 = vrsqrt.f32 %v542_v0  ;;  %vm550_vm2 = vweird.f32 %v542_v0 }
 0x136   : > { %v539_v3 = vpop.xlane.xlu1 %538 }
 0x137   : > { %v541_v4 = vmul.f32 0.03125, %v539_v3 }
 0x139   : > { %v1676_v5 = vpop.eup %1675  ;;  %v543_v6 = vadd.f32 1e-05, %v541_v4  ;;  %v1524_v4 = vld [vmem:[#allocation8 + $0x38] sm:$0xff] }
 0x13a   : > { %v545_v7 = vmul.f32 %v1676_v5, %v542_v0  ;;  %vm551_vm1 = vweird.f32 %v1676_v5  ;;  %966 = vmatpush.bf16.msra.mxu2 %v1524_v4 }
 0x13b   : > { %1677 = vrsqrt.f32 %v543_v6  ;;  %vm552_vm3 = vmor %vm550_vm2, %vm551_vm1  ;;  %vm560_vm5 = vweird.f32 %v543_v6 }
 0x13c   : > { %v546_v8 = vmul.f32 %v1676_v5, %v545_v7 }
 0x13e   : > { %v547_v10 = vmul.f32 0.5, %v546_v8 }
 0x140   : > { %v548_v11 = vsub.f32 1.5, %v547_v10 }
 0x141   : > { %v1678_v12 = vpop.eup %1677 }
 0x142   : > { %v549_v13 = vmul.f32 %v1676_v5, %v548_v11  ;;  %v555_v15 = vmul.f32 %v1678_v12, %v543_v6  ;;  %vm561_vm4 = vweird.f32 %v1678_v12 }
 0x143   : > { %vm562_vm6 = vmor %vm560_vm5, %vm561_vm4 }
 0x144   : > { %v553_v16 = vsel %vm552_vm3, %v1676_v5, %v549_v13  ;;  %v556_v17 = vmul.f32 %v1678_v12, %v555_v15  ;;  %v1532_v5 = vld [vmem:[#allocation10 + $0x38] sm:$0xff] }
 0x145   : > { %v564_v18 = vmul.f32 %v553_v16, %v2194_v9  ;;  %1052 = vmatpush.bf16.msra.mxu3 %v1532_v5 }
 0x146   : > { %v557_v20 = vmul.f32 0.5, %v556_v17 }
 0x147   : > { %v569_v22 = vmul.f32 %v1671_v19, %v564_v18 }
 0x148   : > { %v558_v21 = vsub.f32 1.5, %v557_v20 }
 0x149   : > { %v574_v27 = vadd.f32 %v1672_v23, %v569_v22  ;;  %v1523_v22 = vld [vmem:[#allocation8 + $0x30] sm:$0xff] }
 0x14a   : > { %v559_v24 = vmul.f32 %v1678_v12, %v558_v21  ;;  %967 = vmatpush.bf16.msra.mxu2 %v1523_v22 }
 0x14b   : > { %v576_v29 = vpack.c.bf16 %v574_v27, %v574_v27 }
 0x14c   : > { %v563_v25 = vsel %vm562_vm6, %v1678_v12, %v559_v24 }
 0x14d   : > { %v565_v26 = vmul.f32 %v563_v25, %v2198_v14  ;;  %v602_v32 = vunpack.c.l.b16 %v576_v29  ;;  %v594_v14 = vld [vmem:[%s2473_s4] sm:$0x3] }
 0x14e   : > { %v596_v35 = vperm.slane %v594_v14, 0  ;;  %v597_v36 = vperm.slane %v594_v14, 1  ;;  %v1530_v14 = vld [vmem:[#allocation10 + $0x28] sm:$0xff] }
 0x14f   : > { %v570_v28 = vmul.f32 %v1671_v19, %v565_v26 }
 0x151   : > { %v575_v9 = vadd.f32 %v1672_v23, %v570_v28  ;;  %v1531_v23 = vld [vmem:[#allocation10 + $0x30] sm:$0xff] }
 0x152   : > { %1053 = vmatpush.bf16.msra.mxu3 %v1531_v23 }
 0x153   : > { %v577_v30 = vpack.c.bf16 %v575_v9, %v575_v9  ;;  %v1539_v31 = vpack.c.bf16 %v575_v9, %v574_v27 }
 0x155   : > { %v603_v33 = vunpack.c.l.b16 %v577_v30  ;;  %1540 = vst [vmem:[%s496_s30] sm:$0xff] %v1539_v31  }
 0x156   : > { %1054 = vmatpush.bf16.msra.mxu3 %v1530_v14  ;;  %v1517_v14 = vld [vmem:[#allocation8] sm:$0xff] }
 0x157   : > { %v604_v34 = vpack.c.b16 %v603_v33, %v602_v32 }
 0x159   : > { %694 = vmatmul.bf16.vlgmr.msra.gmra.mxu0 %v604_v34  ;;  %708 = vmatmul.bf16.vlgmr.msra.gmra.mxu1 %v604_v34  ;;  %v1522_v34 = vld [vmem:[#allocation8 + $0x28] sm:$0xff] }
 0x15a   : > { %968 = vmatpush.bf16.msra.mxu2 %v1522_v34 }
 0x1d6   : > { %v695_v37 = vpop.f32.mrf.mxu0  ;;  %v709_v38 = vpop.f32.mrf.mxu1 }
 0x1d7   : > { %v2216_v39 = vadd.f32 %v695_v37, %v596_v35  ;;  %v2218_v40 = vadd.f32 %v709_v38, %v597_v36 }
 0x1d9   : > { %v2221_v41 = vmul.f32 0.70710677, %v2216_v39  ;;  %v2224_v42 = vmul.f32 0.70710677, %v2218_v40 }
 0x1db   : > { %v722_v43 = vmul.f32 %v2221_v41, %v2221_v41  ;;  %v762_v44 = vmul.f32 %v2224_v42, %v2224_v42 }
 0x1dd   : > { %v2230_v45 = vmin.f32 %v722_v43, 16.0  ;;  %v2232_v46 = vmin.f32 %v762_v44, 16.0 }
 0x1de   : > { %v697_v47 = vpop.f32.mrf.mxu0  ;;  %v711_v48 = vpop.f32.mrf.mxu1 }
 0x1df   : > { %v724_v49 = vmul.f32 2.1237322e-06, %v2230_v45  ;;  %v735_v50 = vmul.f32 3.8918573e-05, %v2230_v45  ;;  %v2236_v51 = vadd.f32 %v697_v47, %v596_v35  ;;  %v775_v52 = vmul.f32 3.8918573e-05, %v2232_v46 }
 0x1e0   : > { %v2239_v53 = vadd.f32 %v711_v48, %v597_v36  ;;  %v764_v55 = vmul.f32 2.1237322e-06, %v2232_v46  ;;  %v1521_v47 = vld [vmem:[#allocation8 + $0x20] sm:$0xff] }
 0x1e1   : > { %v736_v54 = vadd.f32 0.001143296, %v735_v50  ;;  %v776_v56 = vadd.f32 0.001143296, %v775_v52  ;;  %v2243_v57 = vmul.f32 0.70710677, %v2236_v51  ;;  %969 = vmatpush.bf16.msra.mxu2 %v1521_v47 }
 0x1e2   : > { %v725_v58 = vadd.f32 0.00028619796, %v724_v49  ;;  %v2247_v60 = vmul.f32 0.70710677, %v2239_v53  ;;  %v765_v0 = vadd.f32 0.00028619796, %v764_v55 }
 0x1e3   : > { %v737_v59 = vmul.f32 %v736_v54, %v2230_v45  ;;  %v777_v61 = vmul.f32 %v776_v56, %v2232_v46  ;;  %v802_v62 = vmul.f32 %v2243_v57, %v2243_v57  ;;  %v1529_v52 = vld [vmem:[#allocation10 + $0x20] sm:$0xff] }
 0x1e4   : > { %v842_v1 = vmul.f32 %v2247_v60, %v2247_v60  ;;  %v726_v6 = vmul.f32 %v725_v58, %v2230_v45  ;;  %v766_v15 = vmul.f32 %v765_v0, %v2232_v46  ;;  %1055 = vmatpush.bf16.msra.mxu3 %v1529_v52 }
 0x1e5   : > { %v738_v63 = vadd.f32 0.014752088, %v737_v59  ;;  %v778_v2 = vadd.f32 0.014752088, %v777_v61  ;;  %v2254_v3 = vmin.f32 %v802_v62, 16.0  ;;  %v1520_v59 = vld [vmem:[#allocation8 + $0x18] sm:$0xff] }
 0x1e6   : > { %v2258_v8 = vmin.f32 %v842_v1, 16.0  ;;  %v727_v19 = vadd.f32 0.0036580483, %v726_v6  ;;  %v767_v9 = vadd.f32 0.0036580483, %v766_v15  ;;  %v1528_v61 = vld [vmem:[#allocation10 + $0x18] sm:$0xff]  ;;  %970 = vmatpush.bf16.msra.mxu2 %v1520_v59 }
 0x1e7   : > { %v739_v7 = vmul.f32 %v738_v63, %v2230_v45  ;;  %v779_v10 = vmul.f32 %v778_v2, %v2232_v46  ;;  %v804_v11 = vmul.f32 2.1237322e-06, %v2254_v3  ;;  %v815_v12 = vmul.f32 3.8918573e-05, %v2254_v3 }
 0x1e8   : > { %v844_v21 = vmul.f32 2.1237322e-06, %v2258_v8  ;;  %v855_v27 = vmul.f32 3.8918573e-05, %v2258_v8  ;;  %v728_v31 = vmul.f32 %v727_v19, %v2230_v45  ;;  %v768_v44 = vmul.f32 %v767_v9, %v2232_v46  ;;  %1056 = vmatpush.bf16.msra.mxu3 %v1528_v61 }
 0x1e9   : > { %v740_v13 = vadd.f32 0.112945676, %v739_v7  ;;  %v780_v16 = vadd.f32 0.112945676, %v779_v10  ;;  %v805_v17 = vadd.f32 0.00028619796, %v804_v11 }
 0x1ea   : > { %v816_v18 = vadd.f32 0.001143296, %v815_v12  ;;  %v845_v37 = vadd.f32 0.00028619796, %v844_v21  ;;  %v856_v38 = vadd.f32 0.001143296, %v855_v27 }
 0x1eb   : > { %v741_v20 = vmul.f32 %v740_v13, %v2230_v45  ;;  %v781_v24 = vmul.f32 %v780_v16, %v2232_v46  ;;  %v806_v25 = vmul.f32 %v805_v17, %v2254_v3  ;;  %v729_v54 = vadd.f32 0.05243302, %v728_v31  ;;  %v1519_v10 = vld [vmem:[#allocation8 + $0x10] sm:$0xff]  ;;  %v1526_v27 = vld [vmem:[#allocation10 + $0x8] sm:$0xff] }
 0x1ec   : > { %v817_v26 = vmul.f32 %v816_v18, %v2254_v3  ;;  %v857_v50 = vmul.f32 %v856_v38, %v2258_v8  ;;  %v846_v56 = vmul.f32 %v845_v37, %v2258_v8  ;;  %v769_v58 = vadd.f32 0.05243302, %v768_v44  ;;  %v1527_v11 = vld [vmem:[#allocation10 + $0x10] sm:$0xff]  ;;  %971 = vmatpush.bf16.msra.mxu2 %v1519_v10 }
 0x1ed   : > { %v742_v28 = vadd.f32 0.4994258, %v741_v20  ;;  %v782_v29 = vadd.f32 0.4994258, %v781_v24  ;;  %v807_v33 = vadd.f32 0.0036580483, %v806_v25  ;;  %v730_v0 = vmul.f32 %v729_v54, %v2230_v45  ;;  %1057 = vmatpush.bf16.msra.mxu3 %v1527_v11 }
 0x1ee   : > { %v818_v30 = vadd.f32 0.014752088, %v817_v26  ;;  %v858_v63 = vadd.f32 0.014752088, %v857_v50  ;;  %v847_v4 = vadd.f32 0.0036580483, %v846_v56  ;;  %v770_v7 = vmul.f32 %v769_v58, %v2232_v46 }
 0x1ef   : > { %v743_v32 = vmul.f32 %v742_v28, %v2230_v45  ;;  %v783_v35 = vmul.f32 %v782_v29, %v2232_v46  ;;  %v808_v55 = vmul.f32 %v807_v33, %v2254_v3  ;;  %v731_v16 = vadd.f32 0.18741608, %v730_v0  ;;  %v1518_v26 = vld [vmem:[#allocation8 + $0x8] sm:$0xff] }
 0x1f0   : > { %v819_v36 = vmul.f32 %v818_v30, %v2254_v3  ;;  %v859_v5 = vmul.f32 %v858_v63, %v2258_v8  ;;  %v848_v22 = vmul.f32 %v847_v4, %v2258_v8  ;;  %v771_v23 = vadd.f32 0.18741608, %v770_v7  ;;  %972 = vmatpush.bf16.msra.mxu2 %v1518_v26 }
 0x1f1   : > { %v2274_v43 = vadd.f32 1.0, %v743_v32  ;;  %v2277_v48 = vadd.f32 1.0, %v783_v35  ;;  %v809_v1 = vadd.f32 0.05243302, %v808_v55  ;;  %v732_v32 = vmul.f32 %v731_v16, %v2230_v45  ;;  %1058 = vmatpush.bf16.msra.mxu3 %v1526_v27  ;;  %v1525_v35 = vld [vmem:[#allocation10] sm:$0xff] }
 0x1f2   : > { %v820_v49 = vadd.f32 0.112945676, %v819_v36  ;;  %v860_v18 = vadd.f32 0.112945676, %v859_v5  ;;  %v849_v31 = vadd.f32 0.05243302, %v848_v22  ;;  %v772_v33 = vmul.f32 %v771_v23, %v2232_v46 }
 0x1f3   : > { %1679 = vrcp.f32 %v2274_v43  ;;  %v810_v20 = vmul.f32 %v809_v1, %v2254_v3  ;;  %v754_v37 = vand.u32 2147483647, %v2274_v43  ;;  %v756_v38 = vand.u32 2147483648, %v2274_v43 }
 0x1f4   : > { %1681 = vrcp.f32 %v2277_v48  ;;  %v821_v62 = vmul.f32 %v820_v49, %v2254_v3  ;;  %v861_v25 = vmul.f32 %v860_v18, %v2258_v8  ;;  %v794_v45 = vand.u32 2147483647, %v2277_v48  ;;  %973 = vmatpush.bf16.msra.mxu2 %v1517_v14 }
 0x1f5   : > { %v811_v30 = vadd.f32 0.18741608, %v810_v20  ;;  %vm750_vm9 = vweird.f32 %v2274_v43  ;;  %v796_v49 = vand.u32 2147483648, %v2277_v48  ;;  %v850_v52 = vmul.f32 %v849_v31, %v2258_v8  ;;  %1059 = vmatpush.bf16.msra.mxu3 %v1525_v35 }
 0x1f6   : > { %v822_v2 = vadd.f32 0.4994258, %v821_v62  ;;  %v862_v29 = vadd.f32 0.4994258, %v861_v25  ;;  %v733_v54 = vadd.f32 1.1283791, %v732_v32  ;;  %vm790_vm11 = vweird.f32 %v2277_v48 }
 0x1f7   : > { %v812_v50 = vmul.f32 %v811_v30, %v2254_v3  ;;  %vm755_vm12 = vcmp.eq.f32.partialorder %v754_v37, 8.507059e+37  ;;  %v773_v58 = vadd.f32 1.1283791, %v772_v33  ;;  %v757_v59 = vor.u32 1.1754944e-38, %v756_v38 }
 0x1f8   : > { %v823_v15 = vmul.f32 %v822_v2, %v2254_v3  ;;  %v863_v34 = vmul.f32 %v862_v29, %v2258_v8  ;;  %vm795_vm14 = vcmp.eq.f32.partialorder %v794_v45, 8.507059e+37  ;;  %v797_v62 = vor.u32 1.1754944e-38, %v796_v49 }
 0x1f9   : > { %v2287_v6 = vpop.eup %1679  ;;  %v813_v63 = vadd.f32 1.1283791, %v812_v50  ;;  %v851_v1 = vadd.f32 0.18741608, %v850_v52  ;;  %v774_v10 = vmul.f32 %v773_v58, %v2224_v42  ;;  %v714_v33 = vmul.f32 0.5, %v2216_v39 }
 0x1fa   : > { %v2290_v12 = vpop.eup %1681  ;;  %v746_v13 = vmul.f32 %v2287_v6, %v2274_v43  ;;  %v2298_v21 = vadd.f32 1.0, %v823_v15  ;;  %vm751_vm7 = vweird.f32 %v2287_v6  ;;  %v2315_v46 = vadd.f32 1.0, %v863_v34 }
 0x1fb   : > { %v786_v17 = vmul.f32 %v2290_v12, %v2277_v48  ;;  %vm791_vm8 = vweird.f32 %v2290_v12  ;;  %vm2321_vm10 = vmor %vm750_vm9, %vm751_vm7  ;;  %v814_v15 = vmul.f32 %v813_v63, %v2243_v57  ;;  %v715_v34 = vmul.f32 0.5, %v2218_v40 }
 0x1fc   : > { %v747_v19 = vsub.f32 1.0, %v746_v13  ;;  %1683 = vrcp.f32 %v2298_v21  ;;  %vm2332_vm13 = vmor %vm790_vm11, %vm791_vm8  ;;  %v836_v0 = vand.u32 2147483648, %v2298_v21  ;;  %v834_v5 = vand.u32 2147483647, %v2298_v21 }
 0x1fd   : > { %v787_v24 = vsub.f32 1.0, %v786_v17  ;;  %1685 = vrcp.f32 %v2315_v46  ;;  %vm830_vm0 = vweird.f32 %v2298_v21  ;;  %v852_v17 = vmul.f32 %v851_v1, %v2258_v8 }
 0x1fe   : > { %v748_v28 = vmul.f32 %v2287_v6, %v747_v19  ;;  %v837_v16 = vor.u32 1.1754944e-38, %v836_v0  ;;  %vm835_vm2 = vcmp.eq.f32.partialorder %v834_v5, 8.507059e+37  ;;  %v874_v57 = vand.u32 2147483647, %v2315_v46 }
 0x1ff   : > { %v788_v9 = vmul.f32 %v2290_v12, %v787_v24  ;;  %v853_v24 = vadd.f32 1.1283791, %v852_v17  ;;  %vm870_vm4 = vweird.f32 %v2315_v46  ;;  %v716_v38 = vmul.f32 0.5, %v2236_v51 }
 0x200   : > { %v749_v36 = vadd.f32 %v2287_v6, %v748_v28  ;;  %vm875_vm6 = vcmp.eq.f32.partialorder %v874_v57, 8.507059e+37  ;;  %v717_v45 = vmul.f32 0.5, %v2239_v53 }
 0x201   : > { %v789_v44 = vadd.f32 %v2290_v12, %v788_v9  ;;  %v854_v8 = vmul.f32 %v853_v24, %v2247_v60 }
 0x202   : > { %v1684_v47 = vpop.eup %1683  ;;  %v753_v43 = vsel %vm2321_vm10, %v2287_v6, %v749_v36  ;;  %v734_v6 = vmul.f32 %v733_v54, %v2221_v41 }
 0x203   : > { %v826_v56 = vmul.f32 %v1684_v47, %v2298_v21  ;;  %v793_v48 = vsel %vm2332_vm13, %v2290_v12, %v789_v44  ;;  %v758_v2 = vsel %vm755_vm12, %v757_v59, %v753_v43  ;;  %vm831_vm15 = vweird.f32 %v1684_v47  ;;  %v1686_v12 = vpop.eup %1685 }
 0x204   : > { %v798_v7 = vsel %vm795_vm14, %v797_v62, %v793_v48  ;;  %v759_v13 = vmul.f32 %v758_v2, %v734_v6  ;;  %vm832_vm1 = vmor %vm830_vm0, %vm831_vm15  ;;  %v866_v20 = vmul.f32 %v1686_v12, %v2315_v46  ;;  %v876_v21 = vand.u32 2147483648, %v2315_v46 }
 0x205   : > { %v827_v61 = vsub.f32 1.0, %v826_v56  ;;  %v799_v18 = vmul.f32 %v798_v7, %v774_v10  ;;  %vm871_vm3 = vweird.f32 %v1686_v12 }
 0x206   : > { %v867_v23 = vsub.f32 1.0, %v866_v20  ;;  %v1421_v42 = vclamps-f32 %v759_v13, 1.0  ;;  %vm872_vm5 = vmor %vm870_vm4, %vm871_vm3  ;;  %v877_v9 = vor.u32 1.1754944e-38, %v876_v21 }
 0x207   : > { %v828_v4 = vmul.f32 %v1684_v47, %v827_v61  ;;  %v1422_v25 = vclamps-f32 %v799_v18, 1.0 }
 0x208   : > { %v868_v26 = vmul.f32 %v1686_v12, %v867_v23  ;;  %v882_v29 = vadd.f32 1.0, %v1421_v42 }
 0x209   : > { %v829_v11 = vadd.f32 %v1684_v47, %v828_v4  ;;  %v883_v30 = vadd.f32 1.0, %v1422_v25 }
 0x20a   : > { %v869_v28 = vadd.f32 %v1686_v12, %v868_v26  ;;  %v886_v36 = vmul.f32 %v882_v29, %v714_v33 }
 0x20b   : > { %v833_v19 = vsel %vm832_vm1, %v1684_v47, %v829_v11  ;;  %v887_v37 = vmul.f32 %v883_v30, %v715_v34 }
 0x20c   : > { %v838_v41 = vsel %vm835_vm2, %v837_v16, %v833_v19  ;;  %v873_v31 = vsel %vm872_vm5, %v1686_v12, %v869_v28 }
 0x20d   : > { %v839_v22 = vmul.f32 %v838_v41, %v814_v15  ;;  %v878_v32 = vsel %vm875_vm6, %v877_v9, %v873_v31  ;;  %v890_v49 = vpack.c.bf16 %v887_v37, %v886_v36 }
 0x20e   : > { %v879_v35 = vmul.f32 %v878_v32, %v854_v8 }
 0x20f   : > { %v1423_v27 = vclamps-f32 %v839_v22, 1.0  ;;  %v914_v39 = vunpack.c.l.b16 %v890_v49  ;;  %v1000_v40 = vunpack.c.h.b16 %v890_v49 }
 0x210   : > { %v1424_v44 = vclamps-f32 %v879_v35, 1.0 }
 0x211   : > { %v884_v14 = vadd.f32 1.0, %v1423_v27 }
 0x212   : > { %v885_v46 = vadd.f32 1.0, %v1424_v44 }
 0x213   : > { %v888_v60 = vmul.f32 %v884_v14, %v716_v38 }
 0x214   : > { %v889_v47 = vmul.f32 %v885_v46, %v717_v45 }
 0x216   : > { %v891_v50 = vpack.c.bf16 %v889_v47, %v888_v60 }
 0x218   : > { %v915_v52 = vunpack.c.l.b16 %v891_v50  ;;  %v1001_v54 = vunpack.c.h.b16 %v891_v50 }
 0x21a   : > { %v916_v55 = vpack.c.b16 %v915_v52, %v914_v39  ;;  %v1002_v56 = vpack.c.b16 %v1001_v54, %v1000_v40 }
 0x21c   : > { %974 = vmatmul.bf16.vlgmr.msra.gmra.mxu2 %v916_v55  ;;  %1060 = vmatmul.bf16.vlgmr.msra.gmra.mxu3 %v1002_v56 }
 0x21d   : > { %1864 = shalt.err (!%p1861_p0)
}
 0x21e   : > { %s1998_s15 = smov 64   ;;  %s1999_s30 = smov 4   ;;  %v1673_v43 = vld [vmem:[%s2475_s6] ss:$0 sm:$0xff] }
 0x21f   : > { %1569 = dma.vmem_to_hbm [thread:$0]  (%p2155_p2), %s1102_s16, 128, %s1104_s14, %s1077_s28, %s1998_s15, %s1998_s15, %s1999_s30  }
 0x220   : > { %v1674_v58 = vld [vmem:[%s2477_s8] ss:$0 sm:$0xff]  ;;  %s1119_s3 = scalar_lea.hbm %s2479_s10, %s2357_s27  ;;  %s2513_s26 = sld [smem:[#allocation28_spill]] }
 0x221   : > { %s503_s16 = scalar_lea.vmem [#allocation12], %s2208_s25  ;;  %s1081_s28 = sand.u32 1, %s2091_s23  }
 0x222   : > { %s2394_s14 = sshll.u32 %s503_s16, 4  ;;  %s2397_s17 = sshll.u32 %s1119_s3, 4  ;;  %s1121_s14 = int_to_ptr.vmem [resolvable:$true] %s2394_s14  ;;  %s1123_s17 = int_to_ptr.hbm [resolvable:$true] %s2397_s17 }
 0x223   : > { %s510_s29 = scalar_lea.vmem [#allocation14], %s2208_s25  ;;  %s2408_s23 = scalar_lea.sflag [#allocation13], %s1081_s28 }
 0x224   : > { %s2400_s13 = sshll.u32 %s510_s29, 4  ;;  %s1879_s11 = sshra.s32 %s1123_s17, 4  ;;  %s1140_s13 = int_to_ptr.vmem [resolvable:$true] %s2400_s13  ;;  %s1880_s11 = int_to_ptr.hbm [resolvable:$true] %s1879_s11 }
 0x225   : > { %s1881_s25 = scalar_lea.hbm %s1880_s11, 8  ;;  %s1885_s20 = scalar_lea.hbm %s2479_s10, 16 }
 0x226   : > { %s1138_s0 = scalar_lea.hbm %s2513_s26, %s2357_s27  ;;  %p1882_p4 = scmp.ne.s32.totalorder %s1880_s11, %s1881_s25 }
 0x227   : > { %s2402_s27 = sshll.u32 %s1138_s0, 4  ;;  %p1886_p10 = scmp.lt.s32.totalorder %s1880_s11, %s2479_s10  ;;  %s1142_s27 = int_to_ptr.hbm [resolvable:$true] %s2402_s27 }
 0x228   : > { %p1883_p6 = pnand %p1882_p4, %p2155_p2  ;;  %p1887_p1 = scmp.lt.s32.totalorder %s1885_s20, %s1881_s25 }
 0x22a   : > { %p1884_p9 = pneg %p1883_p6  ;;  %p1888_p3 = por %p1887_p1, %p1886_p10 }
 0x22c   : > { %p1889_p7 = pnand %p1888_p3, %p1884_p9 }
 0x29f   : > { %v975_v51 = vpop.f32.mrf.mxu2  ;;  %v1061_v53 = vpop.f32.mrf.mxu3 }
 0x2a0   : > { %v976_v48 = vadd.f32 %v1673_v43, %v975_v51  ;;  %v1062_v61 = vadd.f32 %v1674_v58, %v1061_v53 }
 0x2a7   : > { %v977_v3 = vpop.f32.mrf.mxu2  ;;  %v1063_v59 = vpop.f32.mrf.mxu3 }
 0x2a8   : > { %v978_v62 = vadd.f32 %v1673_v43, %v977_v3  ;;  %v1064_v63 = vadd.f32 %v1674_v58, %v1063_v59 }
 0x2aa   : > { %v1544_v0 = vpack.c.bf16 %v978_v62, %v976_v48  ;;  %v1549_v1 = vpack.c.bf16 %v1064_v63, %v1062_v61 }
 0x2ac   : > { %1545 = vst [vmem:[%s503_s16] sm:$0xff] %v1544_v0  }
 0x2ad   : > { %1550 = vst [vmem:[%s510_s29] sm:$0xff] %v1549_v1  }
 0x2ae   : > { %1892 = shalt.err (!%p1889_p7)
}
 0x2af   : > { %1570 = dma.vmem_to_hbm [thread:$0]  (%p2155_p2), %s1121_s14, 128, %s1123_s17, %s2408_s23, %s1998_s15, %s1998_s15, %s1999_s30  }
 0x2b0   : > { %s1907_s24 = sshra.s32 %s1142_s27, 4  ;;  %s1913_s11 = scalar_lea.hbm %s2513_s26, 16  ;;  %s1908_s24 = int_to_ptr.hbm [resolvable:$true] %s1907_s24 }
 0x2b1   : > { %s1909_s16 = scalar_lea.hbm %s1908_s24, 8  ;;  %p1914_p0 = scmp.lt.s32.totalorder %s1908_s24, %s2513_s26 }
 0x2b2   : > { %p1910_p11 = scmp.ne.s32.totalorder %s1908_s24, %s1909_s16  ;;  %p1915_p4 = scmp.lt.s32.totalorder %s1913_s11, %s1909_s16 }
 0x2b4   : > { %p1911_p12 = pnand %p1910_p11, %p2155_p2  ;;  %p1916_p6 = por %p1915_p4, %p1914_p0 }
 0x2b6   : > { %p1912_p13 = pneg %p1911_p12 }
 0x2b8   : > { %p1917_p9 = pnand %p1916_p6, %p1912_p13 }
 0x2ba   : > { %1920 = shalt.err (!%p1917_p9)
}
 0x2bb   : > { %1571 = dma.vmem_to_hbm [thread:$0]  (%p2155_p2), %s1140_s13, 128, %s1142_s27, %s2408_s23, %s1998_s15, %s1998_s15, %s1999_s30  }
 0x2bc PF: > { %s2514_s14 = sld [smem:[#allocation20_spill]]  ;;  %p1593_p10 = pnand %p1343_p8, %p2106_p5 }
 0x2be   : > { %p1594_p1 = pneg %p1593_p10 }
 0x2c2   : > { %s1156_s1 = sand.u32 1, %s2514_s14  }
 0x2c3   : > { %s1157_s20 = scalar_lea.sflag [#allocation4], %s1156_s1 }
 0x2c4   : > { %1958 = dma.done.wait (%p1594_p1), %s1157_s20, 128  }
 0x2c5   : > { %1960 = vsyncadd (%p1594_p1), %s1157_s20, 4294967168  ;;  %s2516_s5 = sadd.s32 4294967294, %s1987_s22  }
 0x2c6   : > { %s1166_s3 = sand.u32 1, %s2516_s5  }
 0x2c7   : > { %s1167_s7 = scalar_lea.sflag [#allocation13], %s1166_s3 }
 0x2c8   : > { %1962 = dma.done.wait (%p1594_p1), %s1167_s7, 256  }
 0x2c9   : > { %1964 = vsyncadd (%p1594_p1), %s1167_s7, 4294967040  ;;  %s33_s22 = sadd.s32 1, %s1987_s22   ;;  %s2517_s15 = sld [smem:[#allocation22_spill]] }
 0x2ca   : > { %p30_p2 = scmp.ge.s32.totalorder %s33_s22, 4   ;;  %s2518_s17 = smov %s1971_s18 }
 0x2cb   : > { %s2519_s18 = smov %s1975_s19  ;;  %s2520_s19 = smov %s2165_s12 }
 0x2cc   : > { %s2521_s20 = smov %s1983_s21  ;;  %32 = sbr.rel (!%p30_p2) target bundleno = 17 (0x11), region = 149 }
 0x2cf   : > { %s2522_s21 = smov %s2517_s15 }
 0x2d1   :  { %1183 = vsyncpa [#allocation3], 1 }
 0x2d2   :  { %1185 = vsyncpa [#allocation3 + $0x1], 1 }
 0x2d3   :  { %1186 = vsyncpa [#allocation6], 1 }
 0x2d4   :  { %1187 = vsyncpa [#allocation9], 1 }
 0x2d5   :  { %1188 = vsyncpa [#allocation4], 1 }
 0x2d6   :  { %1190 = vsyncpa [#allocation4 + $0x1], 1 }
 0x2d7   :  { %1191 = vsyncpa [#allocation13], 1 }
 0x2d8   :  { %1193 = vsyncpa [#allocation13 + $0x1], 1 }

</bundles_post_ra>
